<compile_context>
chip_gen: v7x
topology: tpu7x:2x2x1
jax: 0.10.0
libtpu: 0.0.40
codegen_flags: <defaults>
</compile_context>

<pallas_src>
import jax
import jax.numpy as jnp
from jax.experimental import pallas as pl
from jax.experimental.pallas import tpu as pltpu


def _round_up(n, m):
    return ((n + m - 1) // m) * m


def mlp_kernel(x_ref, w1_ref, b1_ref, w2_ref, b2_ref, w3_ref, b3_ref, o_ref):
    # x arrives as a raw f32 (tile_b, x_dim) block straight from HBM (no wrapper
    # pad/cast pass); cast to bf16 in VMEM right before the MXU.
    x = x_ref[...].astype(jnp.bfloat16)
    # Layer 1: Linear(x_dim -> 384) + ReLU   (bf16 MXU, f32 accumulate + epilogue)
    h1 = jnp.dot(x, w1_ref[...], preferred_element_type=jnp.float32)
    h1 = jnp.maximum(h1 + b1_ref[...], 0.0)
    # Layer 2: Linear(384 -> 256) + ReLU
    h2 = jnp.dot(h1.astype(jnp.bfloat16), w2_ref[...],
                 preferred_element_type=jnp.float32)
    h2 = jnp.maximum(h2 + b2_ref[...], 0.0)
    # Layer 3: Linear(256 -> 128), no activation
    out = jnp.dot(h2.astype(jnp.bfloat16), w3_ref[...],
                  preferred_element_type=jnp.float32) + b3_ref[...]
    o_ref[...] = out.astype(o_ref.dtype)


def _choose_tiling(B):
    """Return (B_pad, tile_b).

    Big, mem-bound-friendly tiles; at least 2 grid steps once the batch is big
    enough for v7x's second TensorCore to matter.
    """
    B_pad = _round_up(max(B, 8), 8)
    if B_pad < 512:
        # Tiny/small batch: one tile. Runtime is dominated by the one-shot
        # ~0.9 MiB weight DMA + launch overhead, not the matmuls.
        return B_pad, B_pad
    if B_pad < 1024:
        # Mid batch: exactly 2 tiles so the "parallel" axis shards across both
        # v7x TensorCores instead of leaving one idle.
        tile_b = _round_up((B_pad + 1) // 2, 8)
        return 2 * tile_b, tile_b
    # Large batch: 512-row tiles (~85% of measured HBM roofline vs ~29% at 128),
    # >= 2 parallel grid steps, VMEM footprint < ~10 MiB on every generation.
    tile_b = 512
    return _round_up(B_pad, tile_b), tile_b


def toynet_forward(x, params, y_dim):
    """x: [B, x_dim] float32 (already flattened). Returns [B, y_dim] float32."""
    w1, b1 = params["w1"], params["b1"]
    w2, b2 = params["w2"], params["b2"]
    w3, b3 = params["w3"], params["b3"]

    B, x_dim = x.shape
    assert w1.shape[0] == x_dim
    h1_pad = w1.shape[1]   # 384
    h2_pad = w2.shape[1]   # 256
    y_pad = w3.shape[1]    # 128

    B_pad, tile_b = _choose_tiling(B)
    grid = (B_pad // tile_b,)

    # Only pad batch rows when needed; x stays f32 and lane-unpadded, so there
    # is no extra HBM pad/cast pass before the kernel (bf16 cast happens in
    # VMEM inside the kernel body).
    xp = x if B_pad == B else jnp.pad(x, ((0, B_pad - B), (0, 0)))

    flops = 2 * B_pad * (x_dim * h1_pad + h1_pad * h2_pad + h2_pad * y_pad)
    bytes_accessed = (B_pad * x_dim * 4
                      + (w1.size + w2.size + w3.size) * 2
                      + (b1.size + b2.size + b3.size) * 4
                      + B_pad * y_pad * 4)

    out_padded = pl.pallas_call(
        mlp_kernel,
        out_shape=jax.ShapeDtypeStruct((B_pad, y_pad), jnp.float32),
        grid=grid,
        in_specs=[
            pl.BlockSpec((tile_b, x_dim), lambda i: (i, 0)),   # x: tiled over batch
            pl.BlockSpec(w1.shape, lambda i: (0, 0)),          # weights/biases:
            pl.BlockSpec(b1.shape, lambda i: (0, 0)),          # whole-array blocks,
            pl.BlockSpec(w2.shape, lambda i: (0, 0)),          # VMEM resident;
            pl.BlockSpec(b2.shape, lambda i: (0, 0)),          # constant index_map
            pl.BlockSpec(w3.shape, lambda i: (0, 0)),          # => fetched once,
            pl.BlockSpec(b3.shape, lambda i: (0, 0)),          # not re-DMA'd per step
        ],
        out_specs=pl.BlockSpec((tile_b, y_pad), lambda i: (i, 0)),
        compiler_params=pltpu.CompilerParams(
            dimension_semantics=("parallel",)),
        cost_estimate=pl.CostEstimate(
            flops=flops, transcendentals=0, bytes_accessed=bytes_accessed),
    )(xp, w1, b1, w2, b2, w3, b3)

    # Slice off batch padding and the 118 dead output lanes (only y_dim real).
    return out_padded[:B, :y_dim]


def kaiming_uniform(key, fan_in, fan_out):
    # Matches the module's weight_init('kaiming'):
    # nn.init.kaiming_uniform(w, a=0, mode='fan_in') -> bound = sqrt(6 / fan_in),
    # biases zeroed.
    bound = (6.0 / fan_in) ** 0.5
    return jax.random.uniform(key, (fan_in, fan_out), jnp.float32, -bound, bound)


def init_toynet_params(key, x_dim, y_dim):
    """Weights stored [in, out] (transpose of PyTorch layout). Output (N) dims
    padded to 128-multiples with zero columns + zero biases (exact: ReLU keeps
    padded lanes at zero; wrapper slices the final logits). Weights in bf16,
    biases in f32."""
    h1, h1_pad = 300, 384
    h2, h2_pad = 150, 256
    y_pad = _round_up(max(y_dim, 128), 128)   # 10 -> 128

    k1, k2, k3 = jax.random.split(key, 3)
    w1 = jnp.zeros((x_dim, h1_pad), jnp.float32).at[:, :h1].set(
        kaiming_uniform(k1, x_dim, h1))
    w2 = jnp.zeros((h1_pad, h2_pad), jnp.float32).at[:h1, :h2].set(
        kaiming_uniform(k2, h1, h2))
    w3 = jnp.zeros((h2_pad, y_pad), jnp.float32).at[:h2, :y_dim].set(
        kaiming_uniform(k3, h2, y_dim))
    return {
        "w1": w1.astype(jnp.bfloat16),
        "b1": jnp.zeros((1, h1_pad), jnp.float32),
        "w2": w2.astype(jnp.bfloat16),
        "b2": jnp.zeros((1, h2_pad), jnp.float32),
        "w3": w3.astype(jnp.bfloat16),
        "b3": jnp.zeros((1, y_pad), jnp.float32),
    }


def reference_forward(x, params, y_dim):
    """Plain-JAX reference doing the identical bf16-weight / f32-accumulate math."""
    xb = x.astype(jnp.bfloat16)
    h1 = jnp.maximum(
        jnp.dot(xb, params["w1"], preferred_element_type=jnp.float32)
        + params["b1"], 0.0)
    h2 = jnp.maximum(
        jnp.dot(h1.astype(jnp.bfloat16), params["w2"],
                preferred_element_type=jnp.float32) + params["b2"], 0.0)
    out = jnp.dot(h2.astype(jnp.bfloat16), params["w3"],
                  preferred_element_type=jnp.float32) + params["b3"]
    return out[:, :y_dim]


if __name__ == "__main__":
    pixel_width = 30
    x_dim = pixel_width ** 2          # 900
    y_dim = 10
    batch = 2

    key = jax.random.PRNGKey(0)
    k_params, k_x = jax.random.split(key)
    params = init_toynet_params(k_params, x_dim, y_dim)

    # NCHW image input, flattened exactly like X.view(X.size(0), -1)
    x_img = jax.random.normal(k_x, (batch, 1, pixel_width, pixel_width), jnp.float32)
    x = x_img.reshape(batch, -1)

    out = toynet_forward(x, params, y_dim)
    out = jax.block_until_ready(out)

    ref = reference_forward(x, params, y_dim)
    assert out.shape == (batch, y_dim), out.shape
    assert jnp.allclose(out, ref, atol=2e-2, rtol=2e-2), (
        jnp.max(jnp.abs(out - ref)))

    print("KERNEL_OK")
</pallas_src>

<mosaic_0001>
module attributes {stable_mosaic.version = 11 : i64} {
  func.func @mlp_kernel(%arg0: i32, %arg1: memref<8x900xf32, #tpu.memory_space<vmem>>, %arg2: memref<900x384xbf16, #tpu.memory_space<vmem>>, %arg3: memref<1x384xf32, #tpu.memory_space<vmem>>, %arg4: memref<384x256xbf16, #tpu.memory_space<vmem>>, %arg5: memref<1x256xf32, #tpu.memory_space<vmem>>, %arg6: memref<256x128xbf16, #tpu.memory_space<vmem>>, %arg7: memref<1x128xf32, #tpu.memory_space<vmem>>, %arg8: memref<8x128xf32, #tpu.memory_space<vmem>>) attributes {dimension_semantics = [#tpu.dimension_semantics<parallel>], iteration_bounds = array<i64: 1>, scalar_prefetch = 0 : i64, scratch_operands = 0 : i64, tpu.core_type = #tpu.core_type<tc>, window_params = [{transform_indices = @transform_0, window_bounds = array<i64: 8, 900>}, {pipeline_mode = #tpu.pipeline_mode<synchronous>, transform_indices = @transform_1, window_bounds = array<i64: 900, 384>}, {pipeline_mode = #tpu.pipeline_mode<synchronous>, transform_indices = @transform_2, window_bounds = array<i64: 1, 384>}, {pipeline_mode = #tpu.pipeline_mode<synchronous>, transform_indices = @transform_3, window_bounds = array<i64: 384, 256>}, {pipeline_mode = #tpu.pipeline_mode<synchronous>, transform_indices = @transform_4, window_bounds = array<i64: 1, 256>}, {pipeline_mode = #tpu.pipeline_mode<synchronous>, transform_indices = @transform_5, window_bounds = array<i64: 256, 128>}, {pipeline_mode = #tpu.pipeline_mode<synchronous>, transform_indices = @transform_6, window_bounds = array<i64: 1, 128>}, {transform_indices = @transform_7, window_bounds = array<i64: 8, 128>}]} {
    %c0 = arith.constant 0 : index
    %c0_0 = arith.constant 0 : index
    %0 = vector.load %arg1[%c0, %c0_0] : memref<8x900xf32, #tpu.memory_space<vmem>>, vector<8x900xf32>
    %1 = arith.truncf %0 : vector<8x900xf32> to vector<8x900xbf16>
    %c0_1 = arith.constant 0 : index
    %c0_2 = arith.constant 0 : index
    %2 = vector.load %arg2[%c0_1, %c0_2] : memref<900x384xbf16, #tpu.memory_space<vmem>>, vector<900x384xbf16>
    %cst = arith.constant dense<0.000000e+00> : vector<8x384xf32>
    %3 = tpu.matmul %1, %2, %cst {dimension_numbers = #tpu.dot_dimension_numbers<[1], [0], [0], [1], [0, 0, 1, 1], [], []>} : vector<8x900xbf16>, vector<900x384xbf16>, vector<8x384xf32> -> vector<8x384xf32>
    %c0_3 = arith.constant 0 : index
    %c0_4 = arith.constant 0 : index
    %4 = vector.load %arg3[%c0_3, %c0_4] : memref<1x384xf32, #tpu.memory_space<vmem>>, vector<1x384xf32>
    %5 = vector.broadcast %4 : vector<1x384xf32> to vector<8x384xf32>
    %6 = arith.addf %3, %5 : vector<8x384xf32>
    %cst_5 = arith.constant 0.000000e+00 : f32
    %7 = vector.broadcast %cst_5 : f32 to vector<8x384xf32>
    %8 = arith.maximumf %6, %7 : vector<8x384xf32>
    %9 = arith.truncf %8 : vector<8x384xf32> to vector<8x384xbf16>
    %c0_6 = arith.constant 0 : index
    %c0_7 = arith.constant 0 : index
    %10 = vector.load %arg4[%c0_6, %c0_7] : memref<384x256xbf16, #tpu.memory_space<vmem>>, vector<384x256xbf16>
    %cst_8 = arith.constant dense<0.000000e+00> : vector<8x256xf32>
    %11 = tpu.matmul %9, %10, %cst_8 {dimension_numbers = #tpu.dot_dimension_numbers<[1], [0], [0], [1], [0, 0, 1, 1], [], []>} : vector<8x384xbf16>, vector<384x256xbf16>, vector<8x256xf32> -> vector<8x256xf32>
    %c0_9 = arith.constant 0 : index
    %c0_10 = arith.constant 0 : index
    %12 = vector.load %arg5[%c0_9, %c0_10] : memref<1x256xf32, #tpu.memory_space<vmem>>, vector<1x256xf32>
    %13 = vector.broadcast %12 : vector<1x256xf32> to vector<8x256xf32>
    %14 = arith.addf %11, %13 : vector<8x256xf32>
    %cst_11 = arith.constant 0.000000e+00 : f32
    %15 = vector.broadcast %cst_11 : f32 to vector<8x256xf32>
    %16 = arith.maximumf %14, %15 : vector<8x256xf32>
    %17 = arith.truncf %16 : vector<8x256xf32> to vector<8x256xbf16>
    %c0_12 = arith.constant 0 : index
    %c0_13 = arith.constant 0 : index
    %18 = vector.load %arg6[%c0_12, %c0_13] : memref<256x128xbf16, #tpu.memory_space<vmem>>, vector<256x128xbf16>
    %cst_14 = arith.constant dense<0.000000e+00> : vector<8x128xf32>
    %19 = tpu.matmul %17, %18, %cst_14 {dimension_numbers = #tpu.dot_dimension_numbers<[1], [0], [0], [1], [0, 0, 1, 1], [], []>} : vector<8x256xbf16>, vector<256x128xbf16>, vector<8x128xf32> -> vector<8x128xf32>
    %c0_15 = arith.constant 0 : index
    %c0_16 = arith.constant 0 : index
    %20 = vector.load %arg7[%c0_15, %c0_16] : memref<1x128xf32, #tpu.memory_space<vmem>>, vector<1x128xf32>
    %21 = vector.broadcast %20 : vector<1x128xf32> to vector<8x128xf32>
    %22 = arith.addf %19, %21 : vector<8x128xf32>
    %c0_17 = arith.constant 0 : index
    %c0_18 = arith.constant 0 : index
    %23 = vector.load %arg8[%c0_17, %c0_18] : memref<8x128xf32, #tpu.memory_space<vmem>>, vector<8x128xf32>
    tpu.vector_store %arg8[%c0_17, %c0_18], %22 {strides = array<i32>} : memref<8x128xf32, #tpu.memory_space<vmem>>, vector<8x128xf32>,
    return
  }
  func.func @transform_0(%arg0: i32) -> (i32, i32) {
    %c0_i32 = arith.constant 0 : i32
    %c0_i32_0 = arith.constant 0 : i32
    return %arg0, %c0_i32 : i32, i32
  }
  func.func @transform_1(%arg0: i32) -> (i32, i32) {
    %c0_i32 = arith.constant 0 : i32
    %c0_i32_0 = arith.constant 0 : i32
    %c0_i32_1 = arith.constant 0 : i32
    return %c0_i32, %c0_i32_0 : i32, i32
  }
  func.func @transform_2(%arg0: i32) -> (i32, i32) {
    %c0_i32 = arith.constant 0 : i32
    %c0_i32_0 = arith.constant 0 : i32
    %c0_i32_1 = arith.constant 0 : i32
    return %c0_i32, %c0_i32_0 : i32, i32
  }
  func.func @transform_3(%arg0: i32) -> (i32, i32) {
    %c0_i32 = arith.constant 0 : i32
    %c0_i32_0 = arith.constant 0 : i32
    %c0_i32_1 = arith.constant 0 : i32
    return %c0_i32, %c0_i32_0 : i32, i32
  }
  func.func @transform_4(%arg0: i32) -> (i32, i32) {
    %c0_i32 = arith.constant 0 : i32
    %c0_i32_0 = arith.constant 0 : i32
    %c0_i32_1 = arith.constant 0 : i32
    return %c0_i32, %c0_i32_0 : i32, i32
  }
  func.func @transform_5(%arg0: i32) -> (i32, i32) {
    %c0_i32 = arith.constant 0 : i32
    %c0_i32_0 = arith.constant 0 : i32
    %c0_i32_1 = arith.constant 0 : i32
    return %c0_i32, %c0_i32_0 : i32, i32
  }
  func.func @transform_6(%arg0: i32) -> (i32, i32) {
    %c0_i32 = arith.constant 0 : i32
    %c0_i32_0 = arith.constant 0 : i32
    %c0_i32_1 = arith.constant 0 : i32
    return %c0_i32, %c0_i32_0 : i32, i32
  }
  func.func @transform_7(%arg0: i32) -> (i32, i32) {
    %c0_i32 = arith.constant 0 : i32
    %c0_i32_0 = arith.constant 0 : i32
    return %arg0, %c0_i32 : i32, i32
  }
}

</mosaic_0001>

<bundles_post_ra>
// kernel: tpu_custom_call.1
= control target key start
LH: loop header
LB: loop body
LE: loop exit
PB: predicated region body
PF: predicated region fallthrough
CT: control target
= control target key end

     0   :  { %12 = vsyncpa [#allocation3], 0  ;;  %s3128_s0 = inlined_call_operand.hbm [shape: f32[8,900], index: 0, kind: input, shape index: {}]   ;;  %s3129_s1 = inlined_call_operand.hbm [shape: bf16[900,384], index: 1, kind: input, shape index: {}]   ;;  %s3130_s2 = inlined_call_operand.vmem [shape: f32[1,384], index: 2, kind: input, shape index: {}]   ;;  %s3131_s3 = inlined_call_operand.hbm [shape: bf16[384,256], index: 3, kind: input, shape index: {}]   ;;  %s3132_s4 = inlined_call_operand.vmem [shape: f32[1,256], index: 4, kind: input, shape index: {}]   ;;  %s3133_s5 = inlined_call_operand.hbm [shape: bf16[256,128], index: 5, kind: input, shape index: {}]   ;;  %s3134_s6 = inlined_call_operand.vmem [shape: f32[1,128], index: 6, kind: input, shape index: {}]   ;;  %s3135_s7 = inlined_call_operand.hbm [shape: f32[8,128], index: 7, kind: output, shape index: {}]  }
   0x1   :  { %13 = vsyncpa [#allocation6], 0 }
   0x2   :  { %14 = vsyncpa [#allocation9], 0 }
   0x3   :  { %15 = vsyncpa [#allocation4], 0  ;;  %s2959_s24 = smov [#allocation5]   ;;  %s2841_s28 = scalar_lea.hbm %s3129_s1, 21696 }
   0x4   :  { %s31_s25 = sshll.u32 %s2959_s24, 4  ;;  %p2842_p0 = scmp.ne.s32.totalorder %s3129_s1, %s2841_s28  ;;  %s32_s25 = int_to_ptr.vmem [resolvable:$true] %s31_s25 }
   0x5   :  { %p2845_p1 = scmp.lt.u32.totalorder %s2841_s28, %s3129_s1 }
   0x7   :  { %p2847_p2 = pnand %p2845_p1, %p2842_p0 }
   0x9   :  { %2850 = shalt.err (!%p2847_p2)
}
   0xa   :  { %s2851_s10 = scalar_lea.vmem %s32_s25, 21696  ;;  %p2856_p4 = scmp.lt.s32.totalorder %s32_s25, %s32_s25 }
   0xb   :  { %p2852_p3 = scmp.ne.s32.totalorder %s32_s25, %s2851_s10  ;;  %p2857_p5 = scmp.lt.s32.totalorder %s2851_s10, %s2851_s10 }
   0xd   :  { %p2858_p6 = por %p2857_p5, %p2856_p4 }
   0xf   :  { %p2859_p7 = pnand %p2858_p6, %p2852_p3 }
  0x11   :  { %2862 = shalt.err (!%p2859_p7)
}
  0x12   :  { %s2960_s11 = smov 192   ;;  %s2961_s12 = smov 12  }
  0x13   :  { %37 = dma.hbm_to_vmem [thread:$0]  %s3129_s1, 21696, %s32_s25, [#allocation6], %s2960_s11, %s2960_s11, %s2961_s12  }
  0x14   :  { %s2962_s15 = smov [#allocation2]   ;;  %s2963_s17 = smov [#allocation7]  }
  0x15   :  { %s22_s16 = sshll.u32 %s2962_s15, 4  ;;  %s45_s18 = sshll.u32 %s2963_s17, 4  ;;  %s23_s16 = int_to_ptr.vmem [resolvable:$true] %s22_s16  ;;  %s46_s18 = int_to_ptr.vmem [resolvable:$true] %s45_s18 }
  0x16   :  { %s2863_s21 = scalar_lea.hbm %s3128_s0, 1024 }
  0x17   :  { %p2864_p8 = scmp.ne.s32.totalorder %s3128_s0, %s2863_s21  ;;  %p2867_p9 = scmp.lt.u32.totalorder %s2863_s21, %s3128_s0 }
  0x19   :  { %p2869_p10 = pnand %p2867_p9, %p2864_p8 }
  0x1b   :  { %2872 = shalt.err (!%p2869_p10)
}
  0x1c   :  { %s2873_s1 = scalar_lea.vmem %s23_s16, 1024  ;;  %p2878_p12 = scmp.lt.s32.totalorder %s23_s16, %s23_s16 }
  0x1d   :  { %p2874_p11 = scmp.ne.s32.totalorder %s23_s16, %s2873_s1  ;;  %p2879_p13 = scmp.lt.s32.totalorder %s2873_s1, %s2873_s1 }
  0x1f   :  { %p2880_p0 = por %p2879_p13, %p2878_p12 }
  0x21   :  { %p2881_p1 = pnand %p2880_p0, %p2874_p11 }
  0x23   :  { %2884 = shalt.err (!%p2881_p1)
}
  0x24   :  { %25 = dma.hbm_to_vmem [thread:$0]  %s3128_s0, 1024, %s23_s16, [#allocation3]  }
  0x25   :  { %s2885_s30 = scalar_lea.hbm %s3131_s3, 6144 }
  0x26   :  { %p2886_p2 = scmp.ne.s32.totalorder %s3131_s3, %s2885_s30  ;;  %p2889_p3 = scmp.lt.u32.totalorder %s2885_s30, %s3131_s3 }
  0x28   :  { %p2891_p4 = pnand %p2889_p3, %p2886_p2 }
  0x2a   :  { %2894 = shalt.err (!%p2891_p4)
}
  0x2b   :  { %s2895_s12 = scalar_lea.vmem %s46_s18, 6144  ;;  %p2900_p6 = scmp.lt.s32.totalorder %s46_s18, %s46_s18 }
  0x2c   :  { %p2896_p5 = scmp.ne.s32.totalorder %s46_s18, %s2895_s12  ;;  %p2901_p7 = scmp.lt.s32.totalorder %s2895_s12, %s2895_s12 }
  0x2e   :  { %p2902_p8 = por %p2901_p7, %p2900_p6 }
  0x30   :  { %p2903_p9 = pnand %p2902_p8, %p2896_p5 }
  0x32   :  { %2906 = shalt.err (!%p2903_p9)
}
  0x33   :  { %s2964_s0 = smov 128   ;;  %s2965_s13 = smov 8  }
  0x34   :  { %51 = dma.hbm_to_vmem [thread:$0]  %s3131_s3, 6144, %s46_s18, [#allocation6], %s2964_s0, %s2964_s0, %s2965_s13  }
  0x35   :  { %s2966_s16 = smov [#allocation8]   ;;  %s2907_s21 = scalar_lea.hbm %s3133_s5, 2048 }
  0x36   :  { %s59_s17 = sshll.u32 %s2966_s16, 4  ;;  %p2908_p10 = scmp.ne.s32.totalorder %s3133_s5, %s2907_s21  ;;  %s60_s17 = int_to_ptr.vmem [resolvable:$true] %s59_s17 }
  0x37   :  { %p2911_p11 = scmp.lt.u32.totalorder %s2907_s21, %s3133_s5 }
  0x39   :  { %p2913_p12 = pnand %p2911_p11, %p2908_p10 }
  0x3b   :  { %2916 = shalt.err (!%p2913_p12)
}
  0x3c   :  { %s2917_s1 = scalar_lea.vmem %s60_s17, 2048  ;;  %p2922_p0 = scmp.lt.s32.totalorder %s60_s17, %s60_s17 }
  0x3d   :  { %p2918_p13 = scmp.ne.s32.totalorder %s60_s17, %s2917_s1  ;;  %p2923_p1 = scmp.lt.s32.totalorder %s2917_s1, %s2917_s1 }
  0x3f   :  { %p2924_p2 = por %p2923_p1, %p2922_p0 }
  0x41   :  { %p2925_p3 = pnand %p2924_p2, %p2918_p13 }
  0x43   :  { %2928 = shalt.err (!%p2925_p3)
}
  0x44   :  { %s2967_s3 = smov 64   ;;  %s2968_s18 = smov 4  }
  0x45   :  { %65 = dma.hbm_to_vmem [thread:$0]  %s3133_s5, 2048, %s60_s17, [#allocation9], %s2967_s3, %s2967_s3, %s2968_s18  }
  0x46   :  { %2951 = dma.done.wait [#allocation3], 1024  }
  0x47   :  { %2952 = vsyncadd [#allocation3], 4294966272 }
  0x48   :  { %2953 = dma.done.wait [#allocation6], 27840  }
  0x49   :  { %2954 = vsyncadd [#allocation6], 4294939456 }
  0x4a   :  { %2955 = dma.done.wait [#allocation9], 2048  }
  0x4b   :  { %2956 = vsyncadd [#allocation9], 4294965248  ;;  %v2526_v0 = vld [vmem:[#allocation5 + $0x4] ss:$12 sps:$4 sm:$0xff]   ;;  %v2528_v1 = vld [vmem:[#allocation5] ss:$12 sps:$4 sm:$0xff]  }
  0x4c   :  { %1258 = vmatprep.subr.bf16.mxu0 %v2526_v0  ;;  %v2529_v2 = vld [vmem:[#allocation5 + $0x1c] ss:$12 sps:$4 sm:$0xff]   ;;  %v2531_v3 = vld [vmem:[#allocation5 + $0x18] ss:$12 sps:$4 sm:$0xff]   ;;  %v2532_v4 = vld [vmem:[#allocation5 + $0x34] ss:$12 sps:$4 sm:$0xff]  }
  0x4d   :  { %1259 = vmatpush1.bf16.msra.mxu0 %v2528_v1  ;;  %v2534_v5 = vld [vmem:[#allocation5 + $0x30] ss:$12 sps:$4 sm:$0xff]   ;;  %v2535_v6 = vld [vmem:[#allocation5 + $0x4c] ss:$12 sps:$4 sm:$0xff]   ;;  %v2537_v7 = vld [vmem:[#allocation5 + $0x48] ss:$12 sps:$4 sm:$0xff]  }
  0x4e   :  { %1260 = vmatprep.subr.bf16.mxu0 %v2529_v2  ;;  %v2538_v8 = vld [vmem:[#allocation5 + $0x64] ss:$12 sps:$4 sm:$0xff]   ;;  %v2540_v9 = vld [vmem:[#allocation5 + $0x60] ss:$12 sps:$4 sm:$0xff]   ;;  %v2556_v10 = vld [vmem:[#allocation5 + $0xc8] ss:$12 sps:$4 sm:$0xff]  }
  0x4f   :  { %v2557_v11 = vld [vmem:[#allocation5 + $0x8] ss:$12 sps:$4 sm:$0xff]   ;;  %2406 = vmatprep.subr.bf16.mxu1 %v2556_v10  ;;  %v2561_v13 = vld [vmem:[#allocation5 + $0xe0] ss:$12 sps:$4 sm:$0xff]   ;;  %v2543_v15 = vld [vmem:[#allocation5 + $0x78] ss:$12 sps:$4 sm:$0xff]  }
  0x50   :  { %v2541_v12 = vld [vmem:[#allocation5 + $0x7c] ss:$12 sps:$4 sm:$0xff]   ;;  %2407 = vmatpush3.bf16.msra.mxu1 %v2557_v11  ;;  %v2562_v14 = vld [vmem:[#allocation5 + $0x20] ss:$12 sps:$4 sm:$0xff]   ;;  %v2566_v17 = vld [vmem:[#allocation5 + $0xf8] ss:$12 sps:$4 sm:$0xff]  }
  0x51   :  { %1261 = vmatpush1.bf16.msra.mxu0 %v2531_v3  ;;  %v2544_v16 = vld [vmem:[#allocation5 + $0x94] ss:$12 sps:$4 sm:$0xff]   ;;  %2408 = vmatprep.subr.bf16.mxu1 %v2561_v13  ;;  %v2567_v18 = vld [vmem:[#allocation5 + $0x38] ss:$12 sps:$4 sm:$0xff]   ;;  %v2546_v19 = vld [vmem:[#allocation5 + $0x90] ss:$12 sps:$4 sm:$0xff]  }
  0x52   :  { %1262 = vmatprep.subr.bf16.mxu0 %v2532_v4  ;;  %v2547_v20 = vld [vmem:[#allocation5 + $0xac] ss:$12 sps:$4 sm:$0xff]   ;;  %v2571_v21 = vld [vmem:[#allocation5 + $0x110] ss:$12 sps:$4 sm:$0xff]   ;;  %v2549_v23 = vld [vmem:[#allocation5 + $0xa8] ss:$12 sps:$4 sm:$0xff]  }
  0x53   :  { %v2572_v22 = vld [vmem:[#allocation5 + $0x50] ss:$12 sps:$4 sm:$0xff]   ;;  %v2576_v24 = vld [vmem:[#allocation5 + $0x128] ss:$12 sps:$4 sm:$0xff]   ;;  %v2581_v27 = vld [vmem:[#allocation5 + $0x140] ss:$12 sps:$4 sm:$0xff]  }
  0x54   :  { %2409 = vmatpush3.bf16.msra.mxu1 %v2562_v14  ;;  %v2550_v25 = vld [vmem:[#allocation5 + $0xc4] ss:$12 sps:$4 sm:$0xff]   ;;  %v2577_v26 = vld [vmem:[#allocation5 + $0x68] ss:$12 sps:$4 sm:$0xff]   ;;  %v2552_v28 = vld [vmem:[#allocation5 + $0xc0] ss:$12 sps:$4 sm:$0xff]  }
  0x55   :  { %1263 = vmatpush1.bf16.msra.mxu0 %v2534_v5  ;;  %2410 = vmatprep.subr.bf16.mxu1 %v2566_v17  ;;  %v2553_v29 = vld [vmem:[#allocation5 + $0xdc] ss:$12 sps:$4 sm:$0xff]   ;;  %v2582_v30 = vld [vmem:[#allocation5 + $0x80] ss:$12 sps:$4 sm:$0xff]   ;;  %v2586_v31 = vld [vmem:[#allocation5 + $0x158] ss:$12 sps:$4 sm:$0xff]  }
  0x56   :  { %1264 = vmatprep.subr.bf16.mxu0 %v2535_v6  ;;  %v2555_v32 = vld [vmem:[#allocation5 + $0xd8] ss:$12 sps:$4 sm:$0xff]   ;;  %v82_v33 = vld [vmem:[#allocation2 + $0x8] sm:$0xff]  ;;  %v2558_v34 = vld [vmem:[#allocation5 + $0xf4] ss:$12 sps:$4 sm:$0xff]   ;;  %vm1244_vm0 = vcmask 31744  }
  0x57   :  { %v90_v35 = vpack.c.bf16 %v82_v33, %v82_v33  ;;  %v2587_v36 = vld [vmem:[#allocation5 + $0x98] ss:$12 sps:$4 sm:$0xff]   ;;  %v2591_v37 = vld [vmem:[#allocation5 + $0x170] ss:$12 sps:$4 sm:$0xff]   ;;  %v2596_v41 = vld [vmem:[#allocation5 + $0x248] ss:$12 sps:$4 sm:$0xff]  }
  0x58   :  { %2411 = vmatpush3.bf16.msra.mxu1 %v2567_v18  ;;  %v2560_v38 = vld [vmem:[#allocation5 + $0xf0] ss:$12 sps:$4 sm:$0xff]   ;;  %v2563_v39 = vld [vmem:[#allocation5 + $0x10c] ss:$12 sps:$4 sm:$0xff]   ;;  %v2565_v42 = vld [vmem:[#allocation5 + $0x108] ss:$12 sps:$4 sm:$0xff]  }
  0x59   :  { %1265 = vmatpush1.bf16.msra.mxu0 %v2537_v7  ;;  %2412 = vmatprep.subr.bf16.mxu1 %v2571_v21  ;;  %v2592_v40 = vld [vmem:[#allocation5 + $0xb0] ss:$12 sps:$4 sm:$0xff]   ;;  %v81_v43 = vld [vmem:[#allocation2] sm:$0xff]  ;;  %v2597_v45 = vld [vmem:[#allocation5 + $0x188] ss:$12 sps:$4 sm:$0xff]   ;;  %vm1248_vm1 = vcmask 1041408  }
  0x5a   :  { %1266 = vmatprep.subr.bf16.mxu0 %v2538_v8  ;;  %1290 = vmatprep.mubr.bf16.mxu0 %v90_v35  ;;  %v2568_v44 = vld [vmem:[#allocation5 + $0x124] ss:$12 sps:$4 sm:$0xff]   ;;  %v89_v46 = vpack.c.bf16 %v81_v43, %v81_v43  ;;  %v2601_v47 = vld [vmem:[#allocation5 + $0x260] ss:$12 sps:$4 sm:$0xff]   ;;  %v2573_v49 = vld [vmem:[#allocation5 + $0x13c] ss:$12 sps:$4 sm:$0xff]  }
  0x5b   :  { %1454 = vmatprep.mubr.bf16.mxu1 %v90_v35  ;;  %v2570_v48 = vld [vmem:[#allocation5 + $0x120] ss:$12 sps:$4 sm:$0xff]   ;;  %v2606_v51 = vld [vmem:[#allocation5 + $0x278] ss:$12 sps:$4 sm:$0xff]   ;;  %v2611_v55 = vld [vmem:[#allocation5 + $0x290] ss:$12 sps:$4 sm:$0xff]  }
  0x5c   :  { %2413 = vmatpush3.bf16.msra.mxu1 %v2572_v22  ;;  %v2602_v50 = vld [vmem:[#allocation5 + $0x1a0] ss:$12 sps:$4 sm:$0xff]   ;;  %v2575_v52 = vld [vmem:[#allocation5 + $0x138] ss:$12 sps:$4 sm:$0xff]   ;;  %v2580_v56 = vld [vmem:[#allocation5 + $0x150] ss:$12 sps:$4 sm:$0xff]  }
  0x5d   :  { %1267 = vmatpush1.bf16.msra.mxu0 %v2540_v9  ;;  %2414 = vmatprep.subr.bf16.mxu1 %v2576_v24  ;;  %v2578_v53 = vld [vmem:[#allocation5 + $0x154] ss:$12 sps:$4 sm:$0xff]   ;;  %v2607_v54 = vld [vmem:[#allocation5 + $0x1b8] ss:$12 sps:$4 sm:$0xff]   ;;  %v2612_v58 = vld [vmem:[#allocation5 + $0x1d0] ss:$12 sps:$4 sm:$0xff]  }
  0x5e   :  { %1268 = vmatprep.subr.bf16.mxu0 %v2541_v12  ;;  %v2583_v57 = vld [vmem:[#allocation5 + $0x16c] ss:$12 sps:$4 sm:$0xff]   ;;  %v2616_v59 = vld [vmem:[#allocation5 + $0x2a8] ss:$12 sps:$4 sm:$0xff]   ;;  %v2590_v61 = vld [vmem:[#allocation5 + $0x184] ss:$12 sps:$4 sm:$0xff]  }
  0x5f   :  { %v2585_v60 = vld [vmem:[#allocation5 + $0x168] ss:$12 sps:$4 sm:$0xff]   ;;  %v2621_v63 = vld [vmem:[#allocation5 + $0x2c0] ss:$12 sps:$4 sm:$0xff]   ;;  %v2626_v3 = vld [vmem:[#allocation5 + $0x2d8] ss:$12 sps:$4 sm:$0xff]  }
  0x60   :  { %2415 = vmatpush3.bf16.msra.mxu1 %v2577_v26  ;;  %v2617_v62 = vld [vmem:[#allocation5 + $0x1e8] ss:$12 sps:$4 sm:$0xff]   ;;  %v2588_v0 = vld [vmem:[#allocation5 + $0x180] ss:$12 sps:$4 sm:$0xff]   ;;  %v2593_v4 = vld [vmem:[#allocation5 + $0x198] ss:$12 sps:$4 sm:$0xff]  }
  0x61   :  { %1269 = vmatpush1.bf16.msra.mxu0 %v2543_v15  ;;  %2416 = vmatprep.subr.bf16.mxu1 %v2581_v27  ;;  %v2595_v1 = vld [vmem:[#allocation5 + $0x19c] ss:$12 sps:$4 sm:$0xff]   ;;  %v2622_v2 = vld [vmem:[#allocation5 + $0x200] ss:$12 sps:$4 sm:$0xff]   ;;  %v2627_v9 = vld [vmem:[#allocation5 + $0x218] ss:$12 sps:$4 sm:$0xff]  }
  0x62   :  { %1270 = vmatprep.subr.bf16.mxu0 %v2544_v16  ;;  %v84_v5 = vld [vmem:[#allocation2 + $0x18] sm:$0xff]  ;;  %v2600_v6 = vld [vmem:[#allocation5 + $0x1b4] ss:$12 sps:$4 sm:$0xff]   ;;  %v2610_v16 = vld [vmem:[#allocation5 + $0x1e4] ss:$12 sps:$4 sm:$0xff]  }
  0x63   :  { %v92_v7 = vpack.c.bf16 %v84_v5, %v84_v5  ;;  %v2598_v8 = vld [vmem:[#allocation5 + $0x1b0] ss:$12 sps:$4 sm:$0xff]   ;;  %v2605_v11 = vld [vmem:[#allocation5 + $0x1cc] ss:$12 sps:$4 sm:$0xff]   ;;  %v2636_v14 = vld [vmem:[#allocation5 + $0x3c8] ss:$12 sps:$4 sm:$0xff]  }
  0x64   :  { %2417 = vmatpush3.bf16.msra.mxu1 %v2582_v30  ;;  %v2631_v10 = vld [vmem:[#allocation5 + $0x2f0] ss:$12 sps:$4 sm:$0xff]   ;;  %v2603_v15 = vld [vmem:[#allocation5 + $0x1c8] ss:$12 sps:$4 sm:$0xff]   ;;  %v2642_v22 = vld [vmem:[#allocation5 + $0x320] ss:$12 sps:$4 sm:$0xff]  }
  0x65   :  { %1271 = vmatpush1.bf16.msra.mxu0 %v2546_v19  ;;  %2418 = vmatprep.subr.bf16.mxu1 %v2586_v31  ;;  %v2632_v12 = vld [vmem:[#allocation5 + $0x230] ss:$12 sps:$4 sm:$0xff]   ;;  %v2637_v18 = vld [vmem:[#allocation5 + $0x308] ss:$12 sps:$4 sm:$0xff]   ;;  %v2641_v19 = vld [vmem:[#allocation5 + $0x3e0] ss:$12 sps:$4 sm:$0xff]  }
  0x66   :  { %1272 = vmatprep.subr.bf16.mxu0 %v2547_v20  ;;  %v83_v13 = vld [vmem:[#allocation2 + $0x10] sm:$0xff]  ;;  %v2608_v20 = vld [vmem:[#allocation5 + $0x1e0] ss:$12 sps:$4 sm:$0xff]   ;;  %v2615_v21 = vld [vmem:[#allocation5 + $0x1fc] ss:$12 sps:$4 sm:$0xff]  }
  0x67   :  { %v3059_v17 = vpack.c.bf16 %v83_v13, %v83_v13  ;;  %v2613_v24 = vld [vmem:[#allocation5 + $0x1f8] ss:$12 sps:$4 sm:$0xff]   ;;  %v2651_v27 = vld [vmem:[#allocation5 + $0x410] ss:$12 sps:$4 sm:$0xff]   ;;  %v2656_v31 = vld [vmem:[#allocation5 + $0x428] ss:$12 sps:$4 sm:$0xff]  }
  0x68   :  { %2419 = vmatpush3.bf16.msra.mxu1 %v2587_v36  ;;  %v2647_v26 = vld [vmem:[#allocation5 + $0x338] ss:$12 sps:$4 sm:$0xff]   ;;  %v2652_v30 = vld [vmem:[#allocation5 + $0x350] ss:$12 sps:$4 sm:$0xff]   ;;  %v2661_v35 = vld [vmem:[#allocation5 + $0x440] ss:$12 sps:$4 sm:$0xff]  }
  0x69   :  { %1273 = vmatpush1.bf16.msra.mxu0 %v2549_v23  ;;  %2420 = vmatprep.subr.bf16.mxu1 %v2591_v37  ;;  %v2646_v23 = vld [vmem:[#allocation5 + $0x3f8] ss:$12 sps:$4 sm:$0xff]   ;;  %v86_v36 = vld [vmem:[#allocation2 + $0x28] sm:$0xff]  ;;  %v2640_v43 = vld [vmem:[#allocation5 + $0x274] ss:$12 sps:$4 sm:$0xff]  }
  0x6a   :  { %1274 = vmatprep.subr.bf16.mxu0 %v2550_v25  ;;  %v2620_v25 = vld [vmem:[#allocation5 + $0x214] ss:$12 sps:$4 sm:$0xff]   ;;  %v2630_v33 = vld [vmem:[#allocation5 + $0x244] ss:$12 sps:$4 sm:$0xff]  }
  0x6b   :  { %v2628_v37 = vld [vmem:[#allocation5 + $0x240] ss:$12 sps:$4 sm:$0xff]   ;;  %v2704_v13 = vld [vmem:[#allocation5 + $0x530] ss:$12 sps:$4 sm:$0xff]  }
  0x6c   :  { %2421 = vmatpush3.bf16.msra.mxu1 %v2592_v40  ;;  %v2662_v40 = vld [vmem:[#allocation5 + $0x380] ss:$12 sps:$4 sm:$0xff]  }
  0x6d   :  { %1275 = vmatpush1.bf16.msra.mxu0 %v2552_v28  ;;  %2428 = vmatprep.subr.bf16.mxu1 %v2596_v41  ;;  %v2618_v28 = vld [vmem:[#allocation5 + $0x210] ss:$12 sps:$4 sm:$0xff]   ;;  %v2666_v41 = vld [vmem:[#allocation5 + $0x458] ss:$12 sps:$4 sm:$0xff]   ;;  %v2668_v5 = vld [vmem:[#allocation5 + $0x300] ss:$12 sps:$4 sm:$0xff]  }
  0x6e   :  { %1276 = vmatprep.subr.bf16.mxu0 %v2553_v29  ;;  %v2625_v29 = vld [vmem:[#allocation5 + $0x22c] ss:$12 sps:$4 sm:$0xff]  }
  0x6f   :  { %1455 = vmatmul.mubr.bf16.vlgmr.msra.gmra.mrb[0].mxu1 %v89_v46 }
  0x70   :  { %2429 = vmatpush3.bf16.msra.mxu1 %v2597_v45  ;;  %1494 = vmatprep.mubr.bf16.mxu1 %v92_v7  ;;  %v2671_v45 = vld [vmem:[#allocation5 + $0x470] ss:$12 sps:$4 sm:$0xff]  }
  0x71   :  { %1277 = vmatpush1.bf16.msra.mxu0 %v2555_v32  ;;  %2430 = vmatprep.subr.bf16.mxu1 %v2601_v47  ;;  %v2623_v32 = vld [vmem:[#allocation5 + $0x228] ss:$12 sps:$4 sm:$0xff]   ;;  %v2645_v47 = vld [vmem:[#allocation5 + $0x28c] ss:$12 sps:$4 sm:$0xff]  }
  0x72   :  { %1278 = vmatprep.subr.bf16.mxu0 %v2558_v34  ;;  %v2657_v34 = vld [vmem:[#allocation5 + $0x368] ss:$12 sps:$4 sm:$0xff]  }
  0x74   :  { %2431 = vmatpush3.bf16.msra.mxu1 %v2602_v50  ;;  %v2643_v50 = vld [vmem:[#allocation5 + $0x288] ss:$12 sps:$4 sm:$0xff]  }
  0x75   :  { %1279 = vmatpush1.bf16.msra.mxu0 %v2560_v38  ;;  %2432 = vmatprep.subr.bf16.mxu1 %v2606_v51  ;;  %v3062_v38 = vpack.c.bf16 %v86_v36, %v86_v36  ;;  %v2650_v51 = vld [vmem:[#allocation5 + $0x2a4] ss:$12 sps:$4 sm:$0xff]   ;;  %v2715_v36 = vld [vmem:[#allocation5 + $0x420] ss:$12 sps:$4 sm:$0xff]  }
  0x76   :  { %1280 = vmatprep.subr.bf16.mxu0 %v2563_v39  ;;  %v2635_v39 = vld [vmem:[#allocation5 + $0x25c] ss:$12 sps:$4 sm:$0xff]  }
  0x78   :  { %2433 = vmatpush3.bf16.msra.mxu1 %v2607_v54  ;;  %v2969_v54 = vmov 0  }
  0x79   :  { %1281 = vmatpush1.bf16.msra.mxu0 %v2565_v42  ;;  %2434 = vmatprep.subr.bf16.mxu1 %v2611_v55  ;;  %v2633_v42 = vld [vmem:[#allocation5 + $0x258] ss:$12 sps:$4 sm:$0xff]   ;;  %v2648_v55 = vld [vmem:[#allocation5 + $0x2a0] ss:$12 sps:$4 sm:$0xff]  }
  0x7a   :  { %1282 = vmatprep.subr.bf16.mxu0 %v2568_v44  ;;  %v2667_v44 = vld [vmem:[#allocation5 + $0x398] ss:$12 sps:$4 sm:$0xff]  }
  0x7c   :  { %2435 = vmatpush3.bf16.msra.mxu1 %v2612_v58  ;;  %v2653_v58 = vld [vmem:[#allocation5 + $0x2b8] ss:$12 sps:$4 sm:$0xff]  }
  0x7d   :  { %1283 = vmatpush1.bf16.msra.mxu0 %v2570_v48  ;;  %2436 = vmatprep.subr.bf16.mxu1 %v2616_v59  ;;  %v2672_v48 = vld [vmem:[#allocation5 + $0x3b0] ss:$12 sps:$4 sm:$0xff]   ;;  %v2660_v59 = vld [vmem:[#allocation5 + $0x2d4] ss:$12 sps:$4 sm:$0xff]  }
  0x7e   :  { %1284 = vmatprep.subr.bf16.mxu0 %v2573_v49  ;;  %v85_v49 = vld [vmem:[#allocation2 + $0x20] sm:$0xff] }
  0x80   :  { %2437 = vmatpush3.bf16.msra.mxu1 %v2617_v62 }
  0x81   :  { %1285 = vmatpush1.bf16.msra.mxu0 %v2575_v52  ;;  %2438 = vmatprep.subr.bf16.mxu1 %v2621_v63  ;;  %v3065_v52 = vpack.c.bf16 %v85_v49, %v85_v49  ;;  %v2658_v63 = vld [vmem:[#allocation5 + $0x2d0] ss:$12 sps:$4 sm:$0xff]   ;;  %v2738_v49 = vld [vmem:[#allocation5 + $0x4cc] ss:$12 sps:$4 sm:$0xff]  }
  0x82   :  { %1286 = vmatprep.subr.bf16.mxu0 %v2578_v53  ;;  %v2676_v53 = vld [vmem:[#allocation5 + $0x488] ss:$12 sps:$4 sm:$0xff]  }
  0x84   :  { %2439 = vmatpush3.bf16.msra.mxu1 %v2622_v2  ;;  %v2663_v2 = vld [vmem:[#allocation5 + $0x2e8] ss:$12 sps:$4 sm:$0xff]  }
  0x85   :  { %1287 = vmatpush1.bf16.msra.mxu0 %v2580_v56  ;;  %2440 = vmatprep.subr.bf16.mxu1 %v2626_v3  ;;  %v2655_v56 = vld [vmem:[#allocation5 + $0x2bc] ss:$12 sps:$4 sm:$0xff]   ;;  %v2670_v3 = vld [vmem:[#allocation5 + $0x304] ss:$12 sps:$4 sm:$0xff]  }
  0x86   :  { %1288 = vmatprep.subr.bf16.mxu0 %v2583_v57  ;;  %v2680_v57 = vld [vmem:[#allocation5 + $0x4a0] ss:$12 sps:$4 sm:$0xff]  }
  0x88   :  { %2441 = vmatpush3.bf16.msra.mxu1 %v2627_v9  ;;  %v2679_v9 = vld [vmem:[#allocation5 + $0x334] ss:$12 sps:$4 sm:$0xff]  }
  0x89   :  { %1289 = vmatpush1.bf16.msra.mxu0 %v2585_v60  ;;  %2442 = vmatprep.subr.bf16.mxu1 %v2631_v10  ;;  %v88_v60 = vld [vmem:[#allocation2 + $0x38] sm:$0xff] }
  0x8a   :  { %1299 = vmatprep.subr.bf16.mxu0 %v2590_v61  ;;  %v2684_v61 = vld [vmem:[#allocation5 + $0x4b8] ss:$12 sps:$4 sm:$0xff]   ;;  %v3070_v62 = vpack.c.bf16 %v88_v60, %v88_v60  ;;  %v2748_v60 = vld [vmem:[#allocation5 + $0x528] ss:$12 sps:$4 sm:$0xff]  }
  0x8b   :  { %v2700_v10 = vld [vmem:[#allocation5 + $0x518] ss:$12 sps:$4 sm:$0xff]  }
  0x8c   :  { %1291 = vmatmul.mubr.bf16.vlgmr.msra.gmra.mrb[0].mxu0 %v89_v46  ;;  %2443 = vmatpush3.bf16.msra.mxu1 %v2632_v12  ;;  %v2638_v46 = vld [vmem:[#allocation5 + $0x270] ss:$12 sps:$4 sm:$0xff]   ;;  %v2683_v12 = vld [vmem:[#allocation5 + $0x34c] ss:$12 sps:$4 sm:$0xff]  }
  0x8d   :  { %1300 = vmatpush1.bf16.msra.mxu0 %v2588_v0  ;;  %1331 = vmatprep.mubr.bf16.mxu0 %v92_v7  ;;  %v2665_v0 = vld [vmem:[#allocation5 + $0x2ec] ss:$12 sps:$4 sm:$0xff]  }
  0x8e   :  { %1301 = vmatprep.subr.bf16.mxu0 %v2595_v1  ;;  %2450 = vmatprep.subr.bf16.mxu1 %v2636_v14  ;;  %v2688_v1 = vld [vmem:[#allocation5 + $0x4d0] ss:$12 sps:$4 sm:$0xff]   ;;  %v2696_v7 = vld [vmem:[#allocation5 + $0x500] ss:$12 sps:$4 sm:$0xff]  }
  0x8f   :  { %1495 = vmatmul.mubr.bf16.vlgmr.msra.gmra.mrb[4].mxu1 %v3059_v17  ;;  %v2708_v14 = vld [vmem:[#allocation5 + $0x548] ss:$0 sps:$4 sm:$0x33]  }
  0x90   :  { %2451 = vmatpush3.bf16.msra.mxu1 %v2637_v18  ;;  %1534 = vmatprep.mubr.bf16.mxu1 %v3062_v38  ;;  %v2685_v18 = vld [vmem:[#allocation5 + $0x360] ss:$12 sps:$4 sm:$0xff]  }
  0x91   :  { %1302 = vmatpush1.bf16.msra.mxu0 %v2593_v4  ;;  %2452 = vmatprep.subr.bf16.mxu1 %v2641_v19  ;;  %v2692_v4 = vld [vmem:[#allocation5 + $0x4e8] ss:$12 sps:$4 sm:$0xff]  }
  0x92   :  { %1303 = vmatprep.subr.bf16.mxu0 %v2600_v6  ;;  %v2675_v6 = vld [vmem:[#allocation5 + $0x31c] ss:$12 sps:$4 sm:$0xff]  }
  0x93   :  { %v2691_v19 = vld [vmem:[#allocation5 + $0x37c] ss:$12 sps:$4 sm:$0xff]  }
  0x94   :  { %2453 = vmatpush3.bf16.msra.mxu1 %v2642_v22  ;;  %v2689_v22 = vld [vmem:[#allocation5 + $0x378] ss:$12 sps:$4 sm:$0xff]  }
  0x95   :  { %1304 = vmatpush1.bf16.msra.mxu0 %v2598_v8  ;;  %2454 = vmatprep.subr.bf16.mxu1 %v2646_v23  ;;  %v2673_v8 = vld [vmem:[#allocation5 + $0x318] ss:$12 sps:$4 sm:$0xff]   ;;  %v2695_v23 = vld [vmem:[#allocation5 + $0x394] ss:$12 sps:$4 sm:$0xff]  }
  0x96   :  { %1305 = vmatprep.subr.bf16.mxu0 %v2605_v11  ;;  %v2677_v11 = vld [vmem:[#allocation5 + $0x330] ss:$12 sps:$4 sm:$0xff]  }
  0x98   :  { %2455 = vmatpush3.bf16.msra.mxu1 %v2647_v26  ;;  %v2697_v26 = vld [vmem:[#allocation5 + $0x3a8] ss:$12 sps:$4 sm:$0xff]  }
  0x99   :  { %1306 = vmatpush1.bf16.msra.mxu0 %v2603_v15  ;;  %2456 = vmatprep.subr.bf16.mxu1 %v2651_v27  ;;  %v2681_v15 = vld [vmem:[#allocation5 + $0x348] ss:$12 sps:$4 sm:$0xff]   ;;  %v2703_v27 = vld [vmem:[#allocation5 + $0x3c4] ss:$12 sps:$4 sm:$0xff]  }
  0x9a   :  { %1307 = vmatprep.subr.bf16.mxu0 %v2610_v16  ;;  %v2687_v16 = vld [vmem:[#allocation5 + $0x364] ss:$12 sps:$4 sm:$0xff]  }
  0x9c   :  { %2457 = vmatpush3.bf16.msra.mxu1 %v2652_v30  ;;  %v2705_v30 = vld [vmem:[#allocation5 + $0x3d8] ss:$12 sps:$4 sm:$0xff]  }
  0x9d   :  { %1308 = vmatpush1.bf16.msra.mxu0 %v2608_v20  ;;  %2458 = vmatprep.subr.bf16.mxu1 %v2656_v31  ;;  %v1256_v20 = vsel %vm1248_vm1, %v2708_v14, 0  ;;  %v2711_v31 = vld [vmem:[#allocation5 + $0x3f4] ss:$12 sps:$4 sm:$0xff]  }
  0x9e   :  { %1309 = vmatprep.subr.bf16.mxu0 %v2615_v21  ;;  %v2771_v14 = vld [vmem:[#allocation7 + $0x60] ss:$8 sps:$4 sm:$0xff]  }
  0xa0   :  { %2459 = vmatpush3.bf16.msra.mxu1 %v2657_v34  ;;  %v2712_v34 = vld [vmem:[#allocation5 + $0x408] ss:$12 sps:$4 sm:$0xff]  }
  0xa1   :  { %1310 = vmatpush1.bf16.msra.mxu0 %v2613_v24  ;;  %2460 = vmatprep.subr.bf16.mxu1 %v2661_v35  ;;  %v2693_v24 = vld [vmem:[#allocation5 + $0x390] ss:$12 sps:$4 sm:$0xff]  }
  0xa2   :  { %1311 = vmatprep.subr.bf16.mxu0 %v2620_v25  ;;  %v2699_v25 = vld [vmem:[#allocation5 + $0x3ac] ss:$12 sps:$4 sm:$0xff]   ;;  %v2717_v35 = vld [vmem:[#allocation5 + $0x424] ss:$12 sps:$4 sm:$0xff]  }
  0xa4   :  { %2461 = vmatpush3.bf16.msra.mxu1 %v2662_v40  ;;  %v2721_v40 = vld [vmem:[#allocation5 + $0x450] ss:$12 sps:$4 sm:$0xff]  }
  0xa5   :  { %1312 = vmatpush1.bf16.msra.mxu0 %v2618_v28  ;;  %2462 = vmatprep.subr.bf16.mxu1 %v2666_v41  ;;  %v2701_v28 = vld [vmem:[#allocation5 + $0x3c0] ss:$12 sps:$4 sm:$0xff]  }
  0xa6   :  { %1313 = vmatprep.subr.bf16.mxu0 %v2625_v29  ;;  %v2707_v29 = vld [vmem:[#allocation5 + $0x3dc] ss:$12 sps:$4 sm:$0xff]   ;;  %v2726_v41 = vld [vmem:[#allocation5 + $0x46c] ss:$12 sps:$4 sm:$0xff]  }
  0xa8   :  { %2463 = vmatpush3.bf16.msra.mxu1 %v2667_v44  ;;  %v2727_v44 = vld [vmem:[#allocation5 + $0x480] ss:$12 sps:$4 sm:$0xff]  }
  0xa9   :  { %1314 = vmatpush1.bf16.msra.mxu0 %v2623_v32  ;;  %2464 = vmatprep.subr.bf16.mxu1 %v2671_v45  ;;  %v2709_v32 = vld [vmem:[#allocation5 + $0x3f0] ss:$12 sps:$4 sm:$0xff]  }
  0xaa   :  { %1315 = vmatprep.subr.bf16.mxu0 %v2630_v33  ;;  %v2714_v33 = vld [vmem:[#allocation5 + $0x40c] ss:$12 sps:$4 sm:$0xff]   ;;  %v2732_v45 = vld [vmem:[#allocation5 + $0x49c] ss:$12 sps:$4 sm:$0xff]  }
  0xac   :  { %2465 = vmatpush3.bf16.msra.mxu1 %v2672_v48  ;;  %v2733_v48 = vld [vmem:[#allocation5 + $0x4b0] ss:$12 sps:$4 sm:$0xff]  }
  0xad   :  { %1316 = vmatpush1.bf16.msra.mxu0 %v2628_v37  ;;  %1542 = vmatprep.subr.bf16.mxu1 %v2969_v54  ;;  %v2720_v37 = vld [vmem:[#allocation5 + $0x43c] ss:$12 sps:$4 sm:$0xff]  }
  0xae   :  { %1317 = vmatprep.subr.bf16.mxu0 %v2635_v39  ;;  %v2723_v39 = vld [vmem:[#allocation5 + $0x454] ss:$12 sps:$4 sm:$0xff]  }
  0xaf   :  { %1535 = vmatmul.mubr.bf16.vlgmr.msra.gmra.mrb[8].mxu1 %v3065_v52 }
  0xb0   :  { %1543 = vmatpush1.bf16.msra.mxu1 %v2676_v53  ;;  %2340 = vmatprep.mubr.msk.bf16.mxu1 %vm1244_vm0, %v3070_v62  ;;  %v2739_v53 = vld [vmem:[#allocation5 + $0x4e0] ss:$12 sps:$4 sm:$0xff]  }
  0xb1   :  { %1318 = vmatpush1.bf16.msra.mxu0 %v2633_v42  ;;  %1544 = vmatprep.subr.bf16.mxu1 %v2969_v54  ;;  %v2724_v42 = vld [vmem:[#allocation5 + $0x468] ss:$12 sps:$4 sm:$0xff]  }
  0xb2   :  { %1319 = vmatprep.subr.bf16.mxu0 %v2640_v43  ;;  %v2729_v43 = vld [vmem:[#allocation5 + $0x484] ss:$12 sps:$4 sm:$0xff]  }
  0xb4   :  { %1545 = vmatpush1.bf16.msra.mxu1 %v2680_v57  ;;  %v2745_v57 = vld [vmem:[#allocation5 + $0x510] ss:$12 sps:$4 sm:$0xff]  }
  0xb5   :  { %1320 = vmatpush1.bf16.msra.mxu0 %v2638_v46  ;;  %1546 = vmatprep.subr.bf16.mxu1 %v2969_v54  ;;  %v2730_v46 = vld [vmem:[#allocation5 + $0x498] ss:$12 sps:$4 sm:$0xff]  }
  0xb6   :  { %1321 = vmatprep.subr.bf16.mxu0 %v2645_v47  ;;  %v2735_v47 = vld [vmem:[#allocation5 + $0x4b4] ss:$12 sps:$4 sm:$0xff]  }
  0xb8   :  { %1547 = vmatpush1.bf16.msra.mxu1 %v2684_v61 }
  0xb9   :  { %1322 = vmatpush1.bf16.msra.mxu0 %v2643_v50  ;;  %1548 = vmatprep.subr.bf16.mxu1 %v2969_v54  ;;  %v2736_v50 = vld [vmem:[#allocation5 + $0x4c8] ss:$12 sps:$4 sm:$0xff]  }
  0xba   :  { %1323 = vmatprep.subr.bf16.mxu0 %v2650_v51  ;;  %v2741_v51 = vld [vmem:[#allocation5 + $0x4e4] ss:$12 sps:$4 sm:$0xff]  }
  0xbc   :  { %1549 = vmatpush1.bf16.msra.mxu1 %v2688_v1  ;;  %v2755_v1 = vld [vmem:[#allocation7 + $0x4] ss:$8 sps:$4 sm:$0xff]  }
  0xbd   :  { %1324 = vmatpush1.bf16.msra.mxu0 %v2648_v55  ;;  %1550 = vmatprep.subr.bf16.mxu1 %v2969_v54  ;;  %v2744_v55 = vld [vmem:[#allocation5 + $0x4fc] ss:$12 sps:$4 sm:$0xff]  }
  0xbe   :  { %1325 = vmatprep.subr.bf16.mxu0 %v2655_v56  ;;  %v2747_v56 = vld [vmem:[#allocation5 + $0x514] ss:$12 sps:$4 sm:$0xff]  }
  0xc0   :  { %1551 = vmatpush1.bf16.msra.mxu1 %v2692_v4  ;;  %v2761_v4 = vld [vmem:[#allocation7 + $0x24] ss:$8 sps:$4 sm:$0xff]  }
  0xc1   :  { %1326 = vmatpush1.bf16.msra.mxu0 %v2653_v58  ;;  %1552 = vmatprep.subr.bf16.mxu1 %v2969_v54  ;;  %v2750_v58 = vld [vmem:[#allocation5 + $0x52c] ss:$12 sps:$4 sm:$0xff]  }
  0xc2   :  { %1327 = vmatprep.subr.bf16.mxu0 %v2660_v59  ;;  %v321_v59 = vld [vmem:[#allocation5 + $0x540] sm:$0x33] }
  0xc3   :  { %v2336_v61 = vcombine.high %v321_v59, %v321_v59 }
  0xc4   :  { %1553 = vmatpush1.bf16.msra.mxu1 %v2696_v7  ;;  %v2762_v7 = vld [vmem:[#allocation7 + $0x30] ss:$8 sps:$4 sm:$0xff]  }
  0xc5   :  { %1328 = vmatpush1.bf16.msra.mxu0 %v2658_v63  ;;  %1554 = vmatprep.subr.bf16.mxu1 %v2969_v54 }
  0xc6   :  { %1329 = vmatprep.subr.bf16.mxu0 %v2665_v0  ;;  %v2753_v0 = vld [vmem:[#allocation7] ss:$8 sps:$4 sm:$0xff]  }
  0xc8   :  { %1555 = vmatpush1.bf16.msra.mxu1 %v2700_v10  ;;  %v2770_v10 = vld [vmem:[#allocation7 + $0x54] ss:$8 sps:$4 sm:$0xff]  }
  0xc9   :  { %1330 = vmatpush1.bf16.msra.mxu0 %v2663_v2  ;;  %1556 = vmatprep.subr.bf16.mxu1 %v2969_v54  ;;  %v2758_v2 = vld [vmem:[#allocation7 + $0x14] ss:$8 sps:$4 sm:$0xff]  }
  0xca   :  { %1340 = vmatprep.subr.bf16.mxu0 %v2670_v3  ;;  %v2756_v3 = vld [vmem:[#allocation7 + $0x10] ss:$8 sps:$4 sm:$0xff]  }
  0xcc   :  { %1332 = vmatmul.mubr.bf16.vlgmr.msra.gmra.mrb[0].mxu0 %v3059_v17  ;;  %v87_v17 = vld [vmem:[#allocation2 + $0x30] sm:$0xff]  ;;  %1557 = vmatpush1.bf16.msra.mxu1 %v2704_v13 }
  0xcd   :  { %1341 = vmatpush1.bf16.msra.mxu0 %v2668_v5  ;;  %1372 = vmatprep.mubr.bf16.mxu0 %v3062_v38  ;;  %v3084_v21 = vpack.c.bf16 %v87_v17, %v87_v17  ;;  %v2718_v38 = vld [vmem:[#allocation5 + $0x438] ss:$12 sps:$4 sm:$0xff]   ;;  %v2759_v5 = vld [vmem:[#allocation7 + $0x20] ss:$8 sps:$4 sm:$0xff]  }
  0xce   :  { %1342 = vmatprep.subr.bf16.mxu0 %v2675_v6  ;;  %1558 = vmatprep.subr.bf16.mxu1 %v2969_v54  ;;  %v2764_v6 = vld [vmem:[#allocation7 + $0x34] ss:$8 sps:$4 sm:$0xff]  }
  0xd0   :  { %1559 = vmatpush1.bf16.msra.mxu1 %v1256_v20  ;;  %v2774_v20 = vld [vmem:[#allocation7 + $0x70] ss:$8 sps:$4 sm:$0xff]  }
  0xd1   :  { %1343 = vmatpush1.bf16.msra.mxu0 %v2673_v8  ;;  %1888 = vmatprep.subr.bf16.mxu1 %v2755_v1  ;;  %v2767_v8 = vld [vmem:[#allocation7 + $0x44] ss:$8 sps:$4 sm:$0xff]  }
  0xd2   :  { %1344 = vmatprep.subr.bf16.mxu0 %v2679_v9  ;;  %v2765_v9 = vld [vmem:[#allocation7 + $0x40] ss:$8 sps:$4 sm:$0xff]  }
  0xd3   :  { %1575 = vmatmul.mubr.bf16.vlgmr.msra.gmra.mrb[12].mxu1 %v3084_v21 }
  0xd4   :  { %1889 = vmatpush1.bf16.msra.mxu1 %v2753_v0 }
  0xd5   :  { %1345 = vmatpush1.bf16.msra.mxu0 %v2677_v11  ;;  %1890 = vmatprep.subr.bf16.mxu1 %v2758_v2  ;;  %v2768_v11 = vld [vmem:[#allocation7 + $0x50] ss:$8 sps:$4 sm:$0xff]  }
  0xd6   :  { %1346 = vmatprep.subr.bf16.mxu0 %v2683_v12  ;;  %v2773_v12 = vld [vmem:[#allocation7 + $0x64] ss:$8 sps:$4 sm:$0xff]   ;;  %v2830_v2 = vld [vmem:[#allocation8 + $0x10] sm:$0xff]  }
  0xd8   :  { %1891 = vmatpush1.bf16.msra.mxu1 %v2756_v3 }
  0xd9   :  { %1347 = vmatpush1.bf16.msra.mxu0 %v2681_v15  ;;  %1892 = vmatprep.subr.bf16.mxu1 %v2761_v4  ;;  %v2831_v4 = vld [vmem:[#allocation8 + $0x58] sm:$0xff]  }
  0xda   :  { %1348 = vmatprep.subr.bf16.mxu0 %v2687_v16  ;;  %v2776_v16 = vld [vmem:[#allocation7 + $0x74] ss:$8 sps:$4 sm:$0xff]  }
  0xdc   :  { %1893 = vmatpush1.bf16.msra.mxu1 %v2759_v5  ;;  %v2832_v5 = vld [vmem:[#allocation8 + $0x18] sm:$0xff]  }
  0xdd   :  { %1349 = vmatpush1.bf16.msra.mxu0 %v2685_v18  ;;  %1894 = vmatprep.subr.bf16.mxu1 %v2764_v6  ;;  %v2833_v6 = vld [vmem:[#allocation8 + $0x60] sm:$0xff]  }
  0xde   :  { %1350 = vmatprep.subr.bf16.mxu0 %v2691_v19 }
  0xe0   :  { %1895 = vmatpush1.bf16.msra.mxu1 %v2762_v7  ;;  %v2834_v7 = vld [vmem:[#allocation8 + $0x20] sm:$0xff]  }
  0xe1   :  { %1351 = vmatpush1.bf16.msra.mxu0 %v2689_v22  ;;  %1896 = vmatprep.subr.bf16.mxu1 %v2767_v8  ;;  %v2777_v22 = vld [vmem:[#allocation7 + $0x80] ss:$8 sps:$4 sm:$0xff]  }
  0xe2   :  { %1352 = vmatprep.subr.bf16.mxu0 %v2695_v23  ;;  %v2782_v23 = vld [vmem:[#allocation7 + $0x94] ss:$8 sps:$4 sm:$0xff]   ;;  %v2835_v8 = vld [vmem:[#allocation8 + $0x68] sm:$0xff]  }
  0xe4   :  { %1897 = vmatpush1.bf16.msra.mxu1 %v2765_v9  ;;  %v2836_v9 = vld [vmem:[#allocation8 + $0x28] sm:$0xff]  }
  0xe5   :  { %1353 = vmatpush1.bf16.msra.mxu0 %v2693_v24  ;;  %1898 = vmatprep.subr.bf16.mxu1 %v2770_v10  ;;  %v2780_v24 = vld [vmem:[#allocation7 + $0x90] ss:$8 sps:$4 sm:$0xff]  }
  0xe6   :  { %1354 = vmatprep.subr.bf16.mxu0 %v2699_v25  ;;  %v2785_v25 = vld [vmem:[#allocation7 + $0xa4] ss:$8 sps:$4 sm:$0xff]  }
  0xe8   :  { %1899 = vmatpush1.bf16.msra.mxu1 %v2768_v11 }
  0xe9   :  { %1355 = vmatpush1.bf16.msra.mxu0 %v2697_v26  ;;  %1900 = vmatprep.subr.bf16.mxu1 %v2773_v12  ;;  %v325_v26 = vlaneseq }
  0xea   :  { %1356 = vmatprep.subr.bf16.mxu0 %v2703_v27  ;;  %v2783_v27 = vld [vmem:[#allocation7 + $0xa0] ss:$8 sps:$4 sm:$0xff]  }
  0xec   :  { %1901 = vmatpush1.bf16.msra.mxu1 %v2771_v14 }
  0xed   :  { %1357 = vmatpush1.bf16.msra.mxu0 %v2701_v28  ;;  %1902 = vmatprep.subr.bf16.mxu1 %v2776_v16  ;;  %v2788_v28 = vld [vmem:[#allocation7 + $0xb4] ss:$8 sps:$4 sm:$0xff]  }
  0xee   :  { %1358 = vmatprep.subr.bf16.mxu0 %v2707_v29  ;;  %v3093_v29 = vshrl.u32 %v325_v26, 7  ;;  %v2804_v26 = vld [vmem:[#allocation7 + $0x110] ss:$8 sps:$4 sm:$0xff]  }
  0xf0   :  { %1903 = vmatpush1.bf16.msra.mxu1 %v2774_v20  ;;  %v327_v10 = vsub.s32 0, %v3093_v29  ;;  %v331_v11 = vsub.s32 1, %v3093_v29 }
  0xf1   :  { %1359 = vmatpush1.bf16.msra.mxu0 %v2705_v30  ;;  %v2786_v30 = vld [vmem:[#allocation7 + $0xb0] ss:$8 sps:$4 sm:$0xff]  }
  0xf2   :  { %1360 = vmatprep.subr.bf16.mxu0 %v2711_v31  ;;  %v2791_v31 = vld [vmem:[#allocation7 + $0xc4] ss:$8 sps:$4 sm:$0xff]  }
  0xf5   :  { %1361 = vmatpush1.bf16.msra.mxu0 %v2709_v32  ;;  %v335_v32 = vsub.s32 2, %v3093_v29  ;;  %v2812_v29 = vld [vmem:[#allocation7 + $0x134] ss:$8 sps:$4 sm:$0xff]  }
  0xf6   :  { %1362 = vmatprep.subr.bf16.mxu0 %v2714_v33  ;;  %v2789_v33 = vld [vmem:[#allocation7 + $0xc0] ss:$8 sps:$4 sm:$0xff]  }
  0xf9   :  { %1363 = vmatpush1.bf16.msra.mxu0 %v2712_v34  ;;  %v3099_v34 = vld [vmem:[%s3130_s2] sm:$0x7] }
  0xfa   :  { %1364 = vmatprep.subr.bf16.mxu0 %v2717_v35  ;;  %v2794_v35 = vld [vmem:[#allocation7 + $0xd4] ss:$8 sps:$4 sm:$0xff]   ;;  %v328_v12 = vrot.slane %v3099_v34, %v327_v10 }
  0xfd   :  { %1365 = vmatpush1.bf16.msra.mxu0 %v2715_v36  ;;  %v336_v36 = vrot.slane %v3099_v34, %v335_v32  ;;  %v2813_v32 = vld [vmem:[#allocation7 + $0x140] ss:$8 sps:$4 sm:$0xff]  }
  0xfe   :  { %1366 = vmatprep.subr.bf16.mxu0 %v2720_v37  ;;  %v2792_v37 = vld [vmem:[#allocation7 + $0xd0] ss:$8 sps:$4 sm:$0xff]  }
 0x101   :  { %1367 = vmatpush1.bf16.msra.mxu0 %v2718_v38 }
 0x102   :  { %1368 = vmatprep.subr.bf16.mxu0 %v2723_v39 }
 0x105   :  { %1369 = vmatpush1.bf16.msra.mxu0 %v2721_v40 }
 0x106   :  { %1370 = vmatprep.subr.bf16.mxu0 %v2726_v41 }
 0x109   :  { %1371 = vmatpush1.bf16.msra.mxu0 %v2724_v42 }
 0x10a   :  { %1381 = vmatprep.subr.bf16.mxu0 %v2729_v43 }
 0x10c   :  { %1373 = vmatmul.mubr.bf16.vlgmr.msra.gmra.mrb[0].mxu0 %v3065_v52  ;;  %v2742_v52 = vld [vmem:[#allocation5 + $0x4f8] ss:$12 sps:$4 sm:$0xff]  }
 0x10d   :  { %1382 = vmatpush1.bf16.msra.mxu0 %v2727_v44  ;;  %2339 = vmatprep.mubr.msk.bf16.mxu0 %vm1244_vm0, %v3070_v62  ;;  %v2335_v62 = vcombine.low %v321_v59, %v321_v59  ;;  %v2827_v59 = vld [vmem:[#allocation8 + $0x48] sm:$0xff]  }
 0x10e   :  { %1383 = vmatprep.subr.bf16.mxu0 %v2732_v45  ;;  %v2797_v45 = vld [vmem:[#allocation7 + $0xe4] ss:$8 sps:$4 sm:$0xff]  }
 0x10f   :  { %v1250_v63 = vsel %vm1248_vm1, %v2335_v62, 0 }
 0x111   :  { %1384 = vmatpush1.bf16.msra.mxu0 %v2730_v46  ;;  %v2795_v46 = vld [vmem:[#allocation7 + $0xe0] ss:$8 sps:$4 sm:$0xff]  }
 0x112   :  { %1385 = vmatprep.subr.bf16.mxu0 %v2735_v47  ;;  %v2800_v47 = vld [vmem:[#allocation7 + $0xf4] ss:$8 sps:$4 sm:$0xff]  }
 0x115   :  { %1386 = vmatpush1.bf16.msra.mxu0 %v2733_v48  ;;  %v2798_v48 = vld [vmem:[#allocation7 + $0xf0] ss:$8 sps:$4 sm:$0xff]  }
 0x116   :  { %1387 = vmatprep.subr.bf16.mxu0 %v2738_v49  ;;  %v2803_v49 = vld [vmem:[#allocation7 + $0x104] ss:$8 sps:$4 sm:$0xff]  }
 0x119   :  { %1388 = vmatpush1.bf16.msra.mxu0 %v2736_v50 }
 0x11a   :  { %1389 = vmatprep.subr.bf16.mxu0 %v2741_v51 }
 0x11d   :  { %1390 = vmatpush1.bf16.msra.mxu0 %v2739_v53 }
 0x11e   :  { %1391 = vmatprep.subr.bf16.mxu0 %v2744_v55 }
 0x121   :  { %1392 = vmatpush1.bf16.msra.mxu0 %v2742_v52 }
 0x122   :  { %1393 = vmatprep.subr.bf16.mxu0 %v2747_v56 }
 0x125   :  { %1394 = vmatpush1.bf16.msra.mxu0 %v2745_v57  ;;  %v2825_v57 = vld [vmem:[#allocation8 + $0x40] sm:$0xff]  }
 0x126   :  { %1395 = vmatprep.subr.bf16.mxu0 %v2750_v58  ;;  %v2826_v58 = vld [vmem:[#allocation8] sm:$0xff]  }
 0x129   :  { %1396 = vmatpush1.bf16.msra.mxu0 %v2748_v60  ;;  %v2828_v60 = vld [vmem:[#allocation8 + $0x8] sm:$0xff]  }
 0x12a   :  { %2338 = vmatprep.subr.msk.bf16.mxu0 %vm1248_vm1, %v2336_v61  ;;  %v2829_v61 = vld [vmem:[#allocation8 + $0x50] sm:$0xff]  }
 0x12d   :  { %1398 = vmatpush1.bf16.msra.mxu0 %v1250_v63 }
 0x12e   :  { %2472 = vmatprep.subr.bf16.mxu0 %v2825_v57 }
 0x130   :  { %1414 = vmatmul.mubr.bf16.vlgmr.msra.gmra.mrb[0].mxu0 %v3084_v21  ;;  %v2779_v21 = vld [vmem:[#allocation7 + $0x84] ss:$8 sps:$4 sm:$0xff]  }
 0x131   :  { %1904 = vmatprep.subr.bf16.mxu1 %v2779_v21  ;;  %2473 = vmatpush3.bf16.msra.mxu0 %v2826_v58 }
 0x132   :  { %1905 = vmatpush1.bf16.msra.mxu1 %v2777_v22  ;;  %2474 = vmatprep.subr.bf16.mxu0 %v2827_v59  ;;  %v2389_v59 = vld [vmem:[%s3134_s6] ss:$0 sm:$0xff] }
 0x133   :  { %1906 = vmatprep.subr.bf16.mxu1 %v2782_v23  ;;  %v2801_v23 = vld [vmem:[#allocation7 + $0x100] ss:$8 sps:$4 sm:$0xff]  }
 0x135   :  { %2475 = vmatpush3.bf16.msra.mxu0 %v2828_v60 }
 0x136   :  { %1907 = vmatpush1.bf16.msra.mxu1 %v2780_v24  ;;  %2476 = vmatprep.subr.bf16.mxu0 %v2829_v61 }
 0x137   :  { %1908 = vmatprep.subr.bf16.mxu1 %v2785_v25  ;;  %v2806_v25 = vld [vmem:[#allocation7 + $0x114] ss:$8 sps:$4 sm:$0xff]  }
 0x139   :  { %2477 = vmatpush3.bf16.msra.mxu0 %v2830_v2 }
 0x13a   :  { %1909 = vmatpush1.bf16.msra.mxu1 %v2783_v27  ;;  %2478 = vmatprep.subr.bf16.mxu0 %v2831_v4  ;;  %v2809_v27 = vld [vmem:[#allocation7 + $0x124] ss:$8 sps:$4 sm:$0xff]  }
 0x13b   :  { %1910 = vmatprep.subr.bf16.mxu1 %v2788_v28  ;;  %v2807_v28 = vld [vmem:[#allocation7 + $0x120] ss:$8 sps:$4 sm:$0xff]  }
 0x13d   :  { %2479 = vmatpush3.bf16.msra.mxu0 %v2832_v5 }
 0x13e   :  { %1911 = vmatpush1.bf16.msra.mxu1 %v2786_v30  ;;  %2480 = vmatprep.subr.bf16.mxu0 %v2833_v6  ;;  %v2810_v30 = vld [vmem:[#allocation7 + $0x130] ss:$8 sps:$4 sm:$0xff]  }
 0x13f   :  { %1912 = vmatprep.subr.bf16.mxu1 %v2791_v31  ;;  %v2815_v31 = vld [vmem:[#allocation7 + $0x144] ss:$8 sps:$4 sm:$0xff]  }
 0x141   :  { %2481 = vmatpush3.bf16.msra.mxu0 %v2834_v7 }
 0x142   :  { %v2422_v13 = vpop.f32.mrb[0].mxu1  ;;  %1913 = vmatpush1.bf16.msra.mxu1 %v2789_v33  ;;  %2482 = vmatprep.subr.bf16.mxu0 %v2835_v8  ;;  %v2818_v33 = vld [vmem:[#allocation7 + $0x154] ss:$8 sps:$4 sm:$0xff]  }
 0x143   :  { %v2423_v15 = vpop.f32.mrb[1].mxu1  ;;  %1914 = vmatprep.subr.bf16.mxu1 %v2794_v35  ;;  %v2821_v35 = vld [vmem:[#allocation7 + $0x164] ss:$8 sps:$4 sm:$0xff]  }
 0x144   :  { %v2424_v17 = vadd.f32 %v2423_v15, %v2422_v13  ;;  %v2425_v18 = vpop.f32.mrb[2].mxu1  ;;  %v332_v13 = vrot.slane %v3099_v34, %v331_v11  ;;  %v2816_v34 = vld [vmem:[#allocation7 + $0x150] ss:$8 sps:$4 sm:$0xff]  }
 0x145   :  { %v2426_v19 = vpop.f32.mrb[3].mxu1  ;;  %2483 = vmatpush3.bf16.msra.mxu0 %v2836_v9 }
 0x146   :  { %v1457_v38 = vadd.f32 %v2424_v17, %v336_v36  ;;  %1915 = vmatpush1.bf16.msra.mxu1 %v2792_v37  ;;  %v2824_v36 = vld [vmem:[#allocation7 + $0x174] ss:$8 sps:$4 sm:$0xff]   ;;  %v2822_v37 = vld [vmem:[#allocation7 + $0x170] ss:$8 sps:$4 sm:$0xff]  }
 0x147   :  { %1916 = vmatprep.subr.bf16.mxu1 %v2797_v45 }
 0x14a   :  { %1917 = vmatpush1.bf16.msra.mxu1 %v2795_v46 }
 0x14b   :  { %1918 = vmatprep.subr.bf16.mxu1 %v2800_v47 }
 0x14e   :  { %1919 = vmatpush1.bf16.msra.mxu1 %v2798_v48 }
 0x14f   :  { %1929 = vmatprep.subr.bf16.mxu1 %v2803_v49 }
 0x162   :  { %v2444_v39 = vpop.f32.mrb[4].mxu1 }
 0x163   :  { %v2445_v40 = vpop.f32.mrb[5].mxu1 }
 0x164   :  { %v2446_v41 = vadd.f32 %v2445_v40, %v2444_v39  ;;  %v2447_v42 = vpop.f32.mrb[6].mxu1  ;;  %v2837_v40 = vld [vmem:[#allocation8 + $0x70] sm:$0xff]  }
 0x165   :  { %v2448_v43 = vpop.f32.mrb[7].mxu1  ;;  %2484 = vmatprep.subr.bf16.mxu0 %v2837_v40  ;;  %v2839_v42 = vld [vmem:[#allocation8 + $0x78] sm:$0xff]  }
 0x166   :  { %v1497_v44 = vadd.f32 %v2446_v41, %v1457_v38  ;;  %v2838_v41 = vld [vmem:[#allocation8 + $0x30] sm:$0xff]   ;;  %v2840_v43 = vld [vmem:[#allocation8 + $0x38] sm:$0xff]  }
 0x167   :  { %2485 = vmatpush3.bf16.msra.mxu0 %v2838_v41 }
 0x168   :  { %2486 = vmatprep.subr.bf16.mxu0 %v2839_v42 }
 0x16b   :  { %2487 = vmatpush3.bf16.msra.mxu0 %v2840_v43 }
 0x182   :  { %v2466_v50 = vpop.f32.mrb[8].mxu1 }
 0x183   :  { %v2467_v51 = vpop.f32.mrb[9].mxu1 }
 0x184   :  { %v2468_v53 = vadd.f32 %v2467_v51, %v2466_v50  ;;  %v2469_v55 = vpop.f32.mrb[10].mxu1 }
 0x185   :  { %v2470_v52 = vpop.f32.mrb[11].mxu1 }
 0x186   :  { %v1537_v56 = vadd.f32 %v2468_v53, %v1497_v44  ;;  %v1636_v44 = vld [vmem:[%s3132_s4] sm:$0x3]  ;;  %s2970_s4 = smov [#allocation10]  }
 0x187   :  { %v1641_v45 = vrot.slane %v1636_v44, %v327_v10  ;;  %v1645_v46 = vrot.slane %v1636_v44, %v331_v11  ;;  %s2156_s9 = sshll.u32 %s2970_s4, 4  ;;  %s2157_s9 = int_to_ptr.vmem [resolvable:$true] %s2156_s9 }
 0x188   :  { %s2929_s10 = scalar_lea.vmem %s2157_s9, 128  ;;  %p2934_p5 = scmp.lt.s32.totalorder %s2157_s9, %s2157_s9 }
 0x189   :  { %p2930_p4 = scmp.ne.s32.totalorder %s2157_s9, %s2929_s10  ;;  %p2935_p6 = scmp.lt.s32.totalorder %s2929_s10, %s2929_s10 }
 0x18b   :  { %p2936_p7 = por %p2935_p6, %p2934_p5 }
 0x18d   :  { %p2937_p8 = pnand %p2936_p7, %p2930_p4 }
 0x1a6   :  { %v1576_v62 = vpop.f32.mrb[12].mxu1 }
 0x1a7   :  { %v3102_v63 = vadd.f32 %v1576_v62, %v1537_v56  ;;  %v1578_v0 = vpop.f32.mrb[13].mxu1 }
 0x1a8   :  { %v1579_v1 = vpop.f32.mrb[14].mxu1 }
 0x1a9   :  { %v1580_v3 = vpop.f32.mrb[15].mxu1  ;;  %v1584_v38 = vmax.f32 %v3102_v63, 0.0 }
 0x1ab   :  { %v1587_v39 = vpack.c.bf16 %v1584_v38, %v1584_v38 }
 0x203   :  { %v1415_v14 = vpop.f32.mrb[0].mxu0 }
 0x204   :  { %v2494_v15 = vadd.f32 %v1415_v14, %v328_v12  ;;  %v1417_v16 = vpop.f32.mrb[1].mxu0 }
 0x205   :  { %v2495_v17 = vadd.f32 %v1417_v16, %v332_v13  ;;  %v1419_v18 = vpop.f32.mrb[2].mxu0 }
 0x206   :  { %v1582_v19 = vmax.f32 %v2494_v15, 0.0  ;;  %v1420_v20 = vpop.f32.mrb[3].mxu0 }
 0x207   :  { %v1583_v21 = vmax.f32 %v2495_v17, 0.0 }
 0x208   :  { %v1585_v24 = vpack.c.bf16 %v1582_v19, %v1582_v19 }
 0x209   :  { %v1586_v22 = vpack.c.bf16 %v1583_v21, %v1583_v21 }
 0x20b   :  { %1920 = vmatprep.mubr.bf16.mxu1 %v1586_v22 }
 0x20c   :  { %1921 = vmatmul.mubr.bf16.vlgmr.msra.gmra.mrb[16].mxu1 %v1585_v24 }
 0x20d   :  { %1930 = vmatpush1.bf16.msra.mxu1 %v2801_v23  ;;  %1961 = vmatprep.mubr.bf16.mxu1 %v2969_v54  ;;  %v2819_v54 = vld [vmem:[#allocation7 + $0x160] ss:$8 sps:$4 sm:$0xff]  }
 0x20e   :  { %1931 = vmatprep.subr.bf16.mxu1 %v2806_v25 }
 0x211   :  { %1932 = vmatpush1.bf16.msra.mxu1 %v2804_v26 }
 0x212   :  { %1933 = vmatprep.subr.bf16.mxu1 %v2809_v27 }
 0x215   :  { %1934 = vmatpush1.bf16.msra.mxu1 %v2807_v28 }
 0x216   :  { %1935 = vmatprep.subr.bf16.mxu1 %v2812_v29 }
 0x219   :  { %1936 = vmatpush1.bf16.msra.mxu1 %v2810_v30 }
 0x21a   :  { %1937 = vmatprep.subr.bf16.mxu1 %v2815_v31 }
 0x21d   :  { %1938 = vmatpush1.bf16.msra.mxu1 %v2813_v32 }
 0x21e   :  { %1939 = vmatprep.subr.bf16.mxu1 %v2818_v33 }
 0x221   :  { %1940 = vmatpush1.bf16.msra.mxu1 %v2816_v34 }
 0x222   :  { %1941 = vmatprep.subr.bf16.mxu1 %v2821_v35 }
 0x225   :  { %1942 = vmatpush1.bf16.msra.mxu1 %v2819_v54 }
 0x226   :  { %1943 = vmatprep.subr.bf16.mxu1 %v2824_v36 }
 0x229   :  { %1944 = vmatpush1.bf16.msra.mxu1 %v2822_v37 }
 0x22c   :  { %1962 = vmatmul.mubr.bf16.vlgmr.msra.gmra.mrb[16].mxu1 %v1587_v39 }
 0x2ff   :  { %v1963_v47 = vpop.f32.mrb[16].mxu1 }
 0x300   :  { %v2496_v48 = vadd.f32 %v1963_v47, %v1641_v45  ;;  %v1965_v49 = vpop.f32.mrb[17].mxu1 }
 0x301   :  { %v2497_v50 = vadd.f32 %v1965_v49, %v1645_v46  ;;  %v1967_v51 = vpop.f32.mrb[18].mxu1 }
 0x302   :  { %v1970_v53 = vmax.f32 %v2496_v48, 0.0  ;;  %v1968_v55 = vpop.f32.mrb[19].mxu1 }
 0x303   :  { %v1971_v52 = vmax.f32 %v2497_v50, 0.0 }
 0x304   :  { %v1972_v57 = vpack.c.bf16 %v1970_v53, %v1970_v53 }
 0x305   :  { %v1973_v56 = vpack.c.bf16 %v1971_v52, %v1971_v52 }
 0x307   :  { %2141 = vmatprep.mubr.bf16.mxu0 %v1973_v56 }
 0x308   :  { %2142 = vmatmul.mubr.bf16.vlgmr.msra.gmra.mrb[4].mxu0 %v1972_v57 }
 0x3db   :  { %v2488_v58 = vpop.f32.mrb[4].mxu0 }
 0x3dc   :  { %v2489_v60 = vpop.f32.mrb[5].mxu0 }
 0x3dd   :  { %v2490_v61 = vadd.f32 %v2489_v60, %v2488_v58  ;;  %v2491_v62 = vpop.f32.mrb[6].mxu0 }
 0x3de   :  { %v2492_v63 = vpop.f32.mrb[7].mxu0 }
 0x3df   :  { %v2144_v0 = vadd.f32 %v2490_v61, %v2389_v59 }
 0x3e1   :  { %2149 = vst [vmem:[#allocation10] sm:$0xff] %v2144_v0 }
 0x3e2   :  { %2940 = shalt.err (!%p2937_p8)
}
 0x3e3   :  { %s2941_s6 = scalar_lea.hbm %s3135_s7, 128 }
 0x3e4   :  { %p2942_p9 = scmp.ne.s32.totalorder %s3135_s7, %s2941_s6  ;;  %p2945_p10 = scmp.lt.u32.totalorder %s2941_s6, %s3135_s7 }
 0x3e6   :  { %p2947_p11 = pnand %p2945_p10, %p2942_p9 }
 0x3e8   :  { %2950 = shalt.err (!%p2947_p11)
}
 0x3e9   :  { %2159 = dma.vmem_to_hbm [thread:$0]  %s2157_s9, 128, %s3135_s7, [#allocation4]  }
 0x3ea   :  { %2957 = dma.done.wait [#allocation4], 128  }
 0x3eb   :  { %2958 = vsyncadd [#allocation4], 4294967168 }
 0x3ec   :  { %2163 = vsyncpa [#allocation3], 1 }
 0x3ed   :  { %2164 = vsyncpa [#allocation6], 1 }
 0x3ee   :  { %2165 = vsyncpa [#allocation9], 1 }
 0x3ef   :  { %2166 = vsyncpa [#allocation4], 1 }

</bundles_post_ra>
